<compile_context>
chip_gen: v7x
topology: tpu7x:2x2x1
jax: 0.10.0
libtpu: 0.0.40
codegen_flags: <defaults>
</compile_context>

<pallas_src>
import math
import functools

import jax
import jax.numpy as jnp
from jax.experimental import pallas as pl
from jax.experimental.pallas import tpu as pltpu


def _round_up(x, m):
    return (x + m - 1) // m * m


def _sublane(itemsize):
    # Rows per vreg: f32 -> 8, bf16 -> 16, int8/fp8 -> 32.
    return max(8, 32 // itemsize)


def _vmem_capacity_bytes():
    try:
        info = pltpu.get_tpu_info()
        cap = getattr(info, "vmem_capacity_bytes", None)
        if cap:
            return int(cap)
    except Exception:
        pass
    return 64 * 1024 * 1024   # conservative fallback (v7x per-core VMEM)


def _lora_kernel(x_ref, a_ref, b_ref, o_ref, acc_ref, *, tk):
    """One (row-tile i, K-tile k) grid step of y = x @ A_scaled @ B."""
    k = pl.program_id(1)

    @pl.when(k == 0)
    def _init():
        acc_ref[...] = jnp.zeros_like(acc_ref)

    # A is fully resident in VMEM (fetched from HBM once); slice this step's
    # K tile. Offsets are multiples of tk (itself a multiple of 128).
    k_off = pl.multiple_of(k * tk, tk)
    a_tile = a_ref[pl.ds(k_off, tk), :]

    # (tm, tk) @ (tk, R_pad) -> f32 accumulator; R_pad % 128 == 0 keeps the
    # accumulate lane-dense.
    acc_ref[...] += jnp.dot(x_ref[...], a_tile,
                            preferred_element_type=jnp.float32)

    @pl.when(k == pl.num_programs(1) - 1)
    def _finalize():
        # Second matmul in the compute dtype (bf16 x bf16 is the native MXU
        # mode); accumulation stays f32 via preferred_element_type.
        xa = acc_ref[...].astype(b_ref.dtype)
        y = jnp.dot(xa, b_ref[...], preferred_element_type=jnp.float32)
        o_ref[...] = y.astype(o_ref.dtype)


def lora_forward(x, A, B, alpha, *, tm=256, tk=2048,
                 compute_dtype=jnp.bfloat16):
    """alpha * (x @ A @ B), both matmuls inside a single Pallas TPU kernel.

    compute_dtype: dtype x/A/B are streamed in (bf16 default: the op is
    HBM-bound and accumulation stays f32). Pass None to keep x.dtype.
    The result is always returned in x's original dtype.
    """
    orig_shape = x.shape
    orig_dtype = x.dtype
    in_dim = orig_shape[-1]
    rank, out_dim = B.shape
    assert A.shape == (in_dim, rank)

    if compute_dtype is None:
        compute_dtype = orig_dtype
    compute_dtype = jnp.dtype(compute_dtype)
    out_dtype = jnp.dtype(orig_dtype)
    in_itm = compute_dtype.itemsize
    out_itm = out_dtype.itemsize

    # Fold alpha into A once (tiny tensor; no per-alpha recompile, works with
    # traced alpha).  alpha*(x@A@B) == (x@(alpha*A))@B.
    A_scaled = (A.astype(jnp.float32) * alpha).astype(compute_dtype)
    B = B.astype(compute_dtype)
    x2d = x.reshape(-1, in_dim).astype(compute_dtype)
    M = x2d.shape[0]

    # Lane/sublane-dense padded extents.
    sub = max(_sublane(in_itm), _sublane(out_itm))
    R_pad = _round_up(max(rank, 1), 128)   # lane-dense A cols / B rows / acc
    N_pad = _round_up(out_dim, 128)        # lane-dense output
    K128 = _round_up(in_dim, 128)

    # Row tile: as large as requested, never bigger than (padded) M.
    tm = max(sub, min(_round_up(tm, sub), _round_up(M, sub)))
    tk_req = max(128, _round_up(tk, 128))

    # Generation-aware VMEM budget (~25% headroom below physical capacity).
    vmem_cap = _vmem_capacity_bytes()
    budget = int(0.75 * vmem_cap)

    def footprint(tm_, tk_, k_pad_):
        return (2 * tm_ * tk_ * in_itm          # x tile (double-buffered)
                + 2 * k_pad_ * R_pad * in_itm   # A, resident (2 bufs budgeted)
                + 2 * R_pad * N_pad * in_itm    # B, resident (2 bufs budgeted)
                + 2 * tm_ * N_pad * out_itm     # output tile (double-buffered)
                + tm_ * R_pad * 4               # f32 accumulator scratch
                + tm_ * R_pad * in_itm          # xa cast in finalize
                + tm_ * N_pad * 4)              # f32 y before astype in finalize

    # Prefer a single full-K tile: no K grid axis, largest DMA grain
    # (comfortably fits the 128 MiB VMEM of v5e/v6e for typical LoRA shapes).
    tk = K128
    if footprint(tm, tk, tk) > budget:
        tk = min(tk_req, K128)
    # Shrink tm first (the double-buffered output tile dominates for large
    # out_dim, e.g. on v7x's 64 MiB VMEM), then tk.
    while footprint(tm, tk, _round_up(in_dim, tk)) > budget and tm > sub:
        tm = max(sub, _round_up(tm // 2, sub))
    while footprint(tm, tk, _round_up(in_dim, tk)) > budget and tk > 128:
        tk = max(128, _round_up(tk // 2, 128))

    K_pad = _round_up(in_dim, tk)
    M_pad = _round_up(M, tm)

    # Zero-padding along K/rank does not change the product; padded output
    # rows/cols are sliced off below.
    if (M_pad, K_pad) != (M, in_dim):
        x2d = jnp.pad(x2d, ((0, M_pad - M), (0, K_pad - in_dim)))
    if (K_pad, R_pad) != (in_dim, rank):
        A_scaled = jnp.pad(A_scaled, ((0, K_pad - in_dim), (0, R_pad - rank)))
    if (R_pad, N_pad) != (rank, out_dim):
        B = jnp.pad(B, ((0, R_pad - rank), (0, N_pad - out_dim)))

    fp = footprint(tm, tk, K_pad)
    vmem_limit = int(min(vmem_cap, max(fp + (8 << 20), 32 << 20)))

    grid = (M_pad // tm, K_pad // tk)

    # TODO(synk): for decode-shaped inputs (tiny M, huge out_dim) on v7x, an
    # extra "parallel" N grid axis (tn ~ 1024-2048) would feed the second
    # TensorCore; omitted here to keep x streamed from HBM exactly once.
    out = pl.pallas_call(
        functools.partial(_lora_kernel, tk=tk),
        out_shape=jax.ShapeDtypeStruct((M_pad, N_pad), out_dtype),
        grid_spec=pltpu.PrefetchScalarGridSpec(
            num_scalar_prefetch=0,
            grid=grid,
            in_specs=[
                pl.BlockSpec((tm, tk), lambda i, k: (i, k)),        # x tile
                pl.BlockSpec((K_pad, R_pad), lambda i, k: (0, 0)),  # A resident
                pl.BlockSpec((R_pad, N_pad), lambda i, k: (0, 0)),  # B resident
            ],
            out_specs=pl.BlockSpec((tm, N_pad), lambda i, k: (i, 0)),
            scratch_shapes=[pltpu.VMEM((tm, R_pad), jnp.float32)],
        ),
        compiler_params=pltpu.CompilerParams(
            dimension_semantics=("parallel", "arbitrary"),
            vmem_limit_bytes=vmem_limit,
        ),
    )(x2d, A_scaled, B)

    out = out[:M, :out_dim]
    return out.reshape(*orig_shape[:-1], out_dim)


def init_lora_params(key, in_dim, rank, out_dim, dtype=jnp.float32):
    """Re-implementation of the PyTorch __init__.

    A: kaiming_uniform_(a=sqrt(5)) on shape (in_dim, rank) -> fan_in = rank,
       gain = sqrt(2 / (1 + 5)), bound = gain * sqrt(3 / fan_in).
    B: zeros of shape (rank, out_dim).
    """
    gain = math.sqrt(2.0 / (1.0 + 5.0))
    bound = gain * math.sqrt(3.0 / rank)
    A = jax.random.uniform(key, (in_dim, rank), dtype=dtype,
                           minval=-bound, maxval=bound)
    B = jnp.zeros((rank, out_dim), dtype=dtype)
    return A, B


if __name__ == "__main__":
    # Small shapes implied by the forward: x (batch, seq, in_dim).
    batch, seq, in_dim = 2, 8, 32
    rank, out_dim = 4, 32
    alpha = 2.0

    key = jax.random.PRNGKey(0)
    kx, kA, kB = jax.random.split(key, 3)

    x = jax.random.normal(kx, (batch, seq, in_dim), dtype=jnp.float32)
    A, B_zero = init_lora_params(kA, in_dim, rank, out_dim)

    # 1) Fresh LoRA (B == 0) -> output must be exactly zero.
    y0 = jax.block_until_ready(lora_forward(x, A, B_zero, alpha))
    assert y0.shape == (batch, seq, out_dim)
    assert y0.dtype == x.dtype
    assert jnp.allclose(y0, jnp.zeros_like(y0), atol=1e-6)

    # 2) Random B, f32 compute path (tight tolerance).
    B = jax.random.normal(kB, (rank, out_dim), dtype=jnp.float32)
    y_ref = alpha * (x @ A @ B)
    y_f32 = jax.block_until_ready(
        lora_forward(x, A, B, alpha, compute_dtype=jnp.float32))
    assert y_f32.shape == (batch, seq, out_dim)
    assert jnp.allclose(y_f32, y_ref, atol=2e-2, rtol=2e-2)

    # 3) Default path: bf16 streaming, f32 accumulation, output in x.dtype.
    y = jax.block_until_ready(lora_forward(x, A, B, alpha))
    assert y.shape == (batch, seq, out_dim) and y.dtype == x.dtype
    assert jnp.allclose(y, y_ref, atol=0.25, rtol=0.1)

    print("KERNEL_OK")
</pallas_src>

<mosaic_0001>
module attributes {stable_mosaic.version = 11 : i64} {
  func.func @_lora_kernel(%arg0: i32, %arg1: i32, %arg2: memref<16x128xbf16, #tpu.memory_space<vmem>>, %arg3: memref<128x128xbf16, #tpu.memory_space<vmem>>, %arg4: memref<128x128xbf16, #tpu.memory_space<vmem>>, %arg5: memref<16x128xf32, #tpu.memory_space<vmem>>, %arg6: memref<16x128xf32, #tpu.memory_space<vmem>>) attributes {dimension_semantics = [#tpu.dimension_semantics<parallel>, #tpu.dimension_semantics<arbitrary>], iteration_bounds = array<i64: 1, 1>, scalar_prefetch = 0 : i64, scratch_operands = 1 : i64, tpu.core_type = #tpu.core_type<tc>, window_params = [{transform_indices = @transform_0, window_bounds = array<i64: 16, 128>}, {pipeline_mode = #tpu.pipeline_mode<synchronous>, transform_indices = @transform_1, window_bounds = array<i64: 128, 128>}, {pipeline_mode = #tpu.pipeline_mode<synchronous>, transform_indices = @transform_2, window_bounds = array<i64: 128, 128>}, {transform_indices = @transform_3, window_bounds = array<i64: 16, 128>}]} {
    %c0_i32 = arith.constant 0 : i32
    %0 = arith.cmpi eq, %arg1, %c0_i32 : i32
    %1 = arith.extui %0 : i1 to i32
    %c0_i32_0 = arith.constant 0 : i32
    %2 = arith.cmpi ne, %1, %c0_i32_0 : i32
    scf.if %2 {
      %cst_9 = arith.constant 0.000000e+00 : f32
      %15 = vector.broadcast %cst_9 : f32 to vector<16x128xf32>
      %c0_10 = arith.constant 0 : index
      %c0_11 = arith.constant 0 : index
      %16 = vector.load %arg6[%c0_10, %c0_11] : memref<16x128xf32, #tpu.memory_space<vmem>>, vector<16x128xf32>
      tpu.vector_store %arg6[%c0_10, %c0_11], %15 {strides = array<i32>} : memref<16x128xf32, #tpu.memory_space<vmem>>, vector<16x128xf32>,
    } else {
    }
    %c128_i32 = arith.constant 128 : i32
    %3 = arith.muli %arg1, %c128_i32 : i32
    %4 = tpu.assume_multiple %3, 128 : i32
    %5 = arith.index_cast %4 : i32 to index
    %c0 = arith.constant 0 : index
    %6 = vector.load %arg3[%5, %c0] : memref<128x128xbf16, #tpu.memory_space<vmem>>, vector<128x128xbf16>
    %c0_1 = arith.constant 0 : index
    %c0_2 = arith.constant 0 : index
    %7 = vector.load %arg6[%c0_1, %c0_2] : memref<16x128xf32, #tpu.memory_space<vmem>>, vector<16x128xf32>
    %c0_3 = arith.constant 0 : index
    %c0_4 = arith.constant 0 : index
    %8 = vector.load %arg2[%c0_3, %c0_4] : memref<16x128xbf16, #tpu.memory_space<vmem>>, vector<16x128xbf16>
    %cst = arith.constant dense<0.000000e+00> : vector<16x128xf32>
    %9 = tpu.matmul %8, %6, %cst {dimension_numbers = #tpu.dot_dimension_numbers<[1], [0], [0], [1], [0, 0, 1, 1], [], []>} : vector<16x128xbf16>, vector<128x128xbf16>, vector<16x128xf32> -> vector<16x128xf32>
    %10 = arith.addf %7, %9 : vector<16x128xf32>
    %c0_5 = arith.constant 0 : index
    %c0_6 = arith.constant 0 : index
    %11 = vector.load %arg6[%c0_5, %c0_6] : memref<16x128xf32, #tpu.memory_space<vmem>>, vector<16x128xf32>
    tpu.vector_store %arg6[%c0_5, %c0_6], %10 {strides = array<i32>} : memref<16x128xf32, #tpu.memory_space<vmem>>, vector<16x128xf32>,
    %c0_i32_7 = arith.constant 0 : i32
    %12 = arith.cmpi eq, %arg1, %c0_i32_7 : i32
    %13 = arith.extui %12 : i1 to i32
    %c0_i32_8 = arith.constant 0 : i32
    %14 = arith.cmpi ne, %13, %c0_i32_8 : i32
    scf.if %14 {
      %c0_9 = arith.constant 0 : index
      %c0_10 = arith.constant 0 : index
      %15 = vector.load %arg6[%c0_9, %c0_10] : memref<16x128xf32, #tpu.memory_space<vmem>>, vector<16x128xf32>
      %16 = arith.truncf %15 : vector<16x128xf32> to vector<16x128xbf16>
      %c0_11 = arith.constant 0 : index
      %c0_12 = arith.constant 0 : index
      %17 = vector.load %arg4[%c0_11, %c0_12] : memref<128x128xbf16, #tpu.memory_space<vmem>>, vector<128x128xbf16>
      %cst_13 = arith.constant dense<0.000000e+00> : vector<16x128xf32>
      %18 = tpu.matmul %16, %17, %cst_13 {dimension_numbers = #tpu.dot_dimension_numbers<[1], [0], [0], [1], [0, 0, 1, 1], [], []>} : vector<16x128xbf16>, vector<128x128xbf16>, vector<16x128xf32> -> vector<16x128xf32>
      %c0_14 = arith.constant 0 : index
      %c0_15 = arith.constant 0 : index
      %19 = vector.load %arg5[%c0_14, %c0_15] : memref<16x128xf32, #tpu.memory_space<vmem>>, vector<16x128xf32>
      tpu.vector_store %arg5[%c0_14, %c0_15], %18 {strides = array<i32>} : memref<16x128xf32, #tpu.memory_space<vmem>>, vector<16x128xf32>,
    } else {
    }
    return
  }
  func.func @transform_0(%arg0: i32, %arg1: i32) -> (i32, i32) {
    %c0_i32 = arith.constant 0 : i32
    return %arg0, %arg1 : i32, i32
  }
  func.func @transform_1(%arg0: i32, %arg1: i32) -> (i32, i32) {
    %c0_i32 = arith.constant 0 : i32
    %c0_i32_0 = arith.constant 0 : i32
    %c0_i32_1 = arith.constant 0 : i32
    return %c0_i32, %c0_i32_0 : i32, i32
  }
  func.func @transform_2(%arg0: i32, %arg1: i32) -> (i32, i32) {
    %c0_i32 = arith.constant 0 : i32
    %c0_i32_0 = arith.constant 0 : i32
    %c0_i32_1 = arith.constant 0 : i32
    return %c0_i32, %c0_i32_0 : i32, i32
  }
  func.func @transform_3(%arg0: i32, %arg1: i32) -> (i32, i32) {
    %c0_i32 = arith.constant 0 : i32
    %c0_i32_0 = arith.constant 0 : i32
    return %arg0, %c0_i32 : i32, i32
  }
}

</mosaic_0001>

<bundles_post_ra>
// kernel: tpu_custom_call.1
= control target key start
LH: loop header
LB: loop body
LE: loop exit
PB: predicated region body
PF: predicated region fallthrough
CT: control target
= control target key end

     0   :  { %8 = vsyncpa [#allocation4], 0  ;;  %s610_s0 = inlined_call_operand.hbm [shape: bf16[16,128], index: 0, kind: input, shape index: {}]   ;;  %s611_s1 = inlined_call_operand.hbm [shape: bf16[128,128], index: 1, kind: input, shape index: {}]   ;;  %s612_s2 = inlined_call_operand.hbm [shape: bf16[128,128], index: 2, kind: input, shape index: {}]   ;;  %s613_s3 = inlined_call_operand.hbm [shape: f32[16,128], index: 3, kind: output, shape index: {}]  }
   0x1   :  { %9 = vsyncpa [#allocation7], 0 }
   0x2   :  { %10 = vsyncpa [#allocation5], 0  ;;  %s516_s12 = smov [#allocation6]   ;;  %s517_s14 = smov [#allocation3]  }
   0x3   :  { %s28_s13 = sshll.u32 %s516_s12, 4  ;;  %s16_s15 = sshll.u32 %s517_s14, 4  ;;  %s29_s13 = int_to_ptr.vmem [resolvable:$true] %s28_s13  ;;  %s546_s15 = int_to_ptr.vmem [resolvable:$true] %s16_s15 }
   0x4   :  { %s422_s18 = scalar_lea.hbm %s611_s1, 1024 }
   0x5   :  { %p423_p0 = scmp.ne.s32.totalorder %s611_s1, %s422_s18  ;;  %p426_p1 = scmp.lt.u32.totalorder %s422_s18, %s611_s1 }
   0x7   :  { %p428_p2 = pnand %p426_p1, %p423_p0 }
   0x9   :  { %431 = shalt.err (!%p428_p2)
}
   0xa   :  { %s432_s23 = scalar_lea.vmem %s29_s13, 1024  ;;  %p437_p4 = scmp.lt.s32.totalorder %s29_s13, %s29_s13 }
   0xb   :  { %p433_p3 = scmp.ne.s32.totalorder %s29_s13, %s432_s23  ;;  %p438_p5 = scmp.lt.s32.totalorder %s432_s23, %s432_s23 }
   0xd   :  { %p439_p6 = por %p438_p5, %p437_p4 }
   0xf   :  { %p440_p7 = pnand %p439_p6, %p433_p3 }
  0x11   :  { %443 = shalt.err (!%p440_p7)
}
  0x12   :  { %s518_s24 = smov 64   ;;  %s519_s25 = smov 4  }
  0x13   :  { %34 = dma.hbm_to_vmem [thread:$0]  %s611_s1, 1024, %s29_s13, [#allocation7], %s518_s24, %s518_s24, %s519_s25  }
  0x14   :  { %s444_s30 = scalar_lea.hbm %s610_s0, 128 }
  0x15   :  { %p445_p8 = scmp.ne.s32.totalorder %s610_s0, %s444_s30  ;;  %p448_p9 = scmp.lt.u32.totalorder %s444_s30, %s610_s0 }
  0x17   :  { %p450_p10 = pnand %p448_p9, %p445_p8 }
  0x19   :  { %453 = shalt.err (!%p450_p10)
}
  0x1a   :  { %s454_s8 = scalar_lea.vmem %s546_s15, 128  ;;  %p459_p12 = scmp.lt.s32.totalorder %s546_s15, %s546_s15 }
  0x1b   :  { %p455_p11 = scmp.ne.s32.totalorder %s546_s15, %s454_s8  ;;  %p460_p13 = scmp.lt.s32.totalorder %s454_s8, %s454_s8 }
  0x1d   :  { %p461_p0 = por %p460_p13, %p459_p12 }
  0x1f   :  { %p462_p1 = pnand %p461_p0, %p455_p11 }
  0x21   :  { %465 = shalt.err (!%p462_p1)
}
  0x22   :  { %22 = dma.hbm_to_vmem [thread:$0]  %s610_s0, 128, %s546_s15, [#allocation4], %s518_s24, %s518_s24, %s519_s25  }
  0x23   :  { %s520_s10 = smov [#allocation8]   ;;  %s466_s14 = scalar_lea.hbm %s612_s2, 1024 }
  0x24   :  { %s40_s11 = sshll.u32 %s520_s10, 4  ;;  %p467_p2 = scmp.ne.s32.totalorder %s612_s2, %s466_s14  ;;  %s41_s11 = int_to_ptr.vmem [resolvable:$true] %s40_s11 }
  0x25   :  { %p470_p3 = scmp.lt.u32.totalorder %s466_s14, %s612_s2 }
  0x27   :  { %p472_p4 = pnand %p470_p3, %p467_p2 }
  0x29   :  { %475 = shalt.err (!%p472_p4)
}
  0x2a   :  { %s476_s20 = scalar_lea.vmem %s41_s11, 1024  ;;  %p481_p6 = scmp.lt.s32.totalorder %s41_s11, %s41_s11 }
  0x2b   :  { %p477_p5 = scmp.ne.s32.totalorder %s41_s11, %s476_s20  ;;  %p482_p7 = scmp.lt.s32.totalorder %s476_s20, %s476_s20 }
  0x2d   :  { %p483_p8 = por %p482_p7, %p481_p6 }
  0x2f   :  { %p484_p9 = pnand %p483_p8, %p477_p5 }
  0x31   :  { %487 = shalt.err (!%p484_p9)
}
  0x32   :  { %46 = dma.hbm_to_vmem [thread:$0]  %s612_s2, 1024, %s41_s11, [#allocation7], %s518_s24, %s518_s24, %s519_s25  }
  0x33   :  { %510 = dma.done.wait [#allocation4], 128  }
  0x34   :  { %511 = vsyncadd [#allocation4], 4294967168 }
  0x35   :  { %512 = dma.done.wait [#allocation7], 2048  }
  0x36   :  { %513 = vsyncadd [#allocation7], 4294965248  ;;  %v521_v0 = vmov 0.0   ;;  %vm522_vm0 = vmmov 0   ;;  %v405_v1 = vld [vmem:[#allocation6] sm:$0xff]   ;;  %v406_v2 = vld [vmem:[#allocation6 + $0x8] sm:$0xff]  }
  0x37   :  { %355 = vmatprep.subr.bf16.mxu0 %v521_v0  ;;  %371 = vmatprep.mubr.msk.bf16.mxu0 %vm522_vm0, %v521_v0  ;;  %v407_v3 = vld [vmem:[#allocation6 + $0x10] sm:$0xff]   ;;  %v414_v4 = vld [vmem:[#allocation8] sm:$0xff]   ;;  %v408_v5 = vld [vmem:[#allocation6 + $0x18] sm:$0xff]   ;;  %s523_s2 = smov [#allocation9]  }
  0x38   :  { %375 = vmatprep.subr.bf16.mxu1 %v521_v0  ;;  %391 = vmatprep.mubr.msk.bf16.mxu1 %vm522_vm0, %v521_v0  ;;  %v415_v6 = vld [vmem:[#allocation8 + $0x8] sm:$0xff]   ;;  %v409_v7 = vld [vmem:[#allocation6 + $0x20] sm:$0xff]   ;;  %v416_v8 = vld [vmem:[#allocation8 + $0x10] sm:$0xff]   ;;  %s305_s21 = sshll.u32 %s523_s2, 4  ;;  %s306_s21 = int_to_ptr.vmem [resolvable:$true] %s305_s21 }
  0x39   :  { %356 = vmatpush3.bf16.msra.mxu0 %v405_v1  ;;  %376 = vmatpush3.bf16.msra.mxu1 %v414_v4  ;;  %v410_v9 = vld [vmem:[#allocation6 + $0x28] sm:$0xff]   ;;  %v417_v10 = vld [vmem:[#allocation8 + $0x18] sm:$0xff]   ;;  %v411_v11 = vld [vmem:[#allocation6 + $0x30] sm:$0xff]   ;;  %s488_s22 = scalar_lea.vmem %s306_s21, 256  ;;  %p493_p11 = scmp.lt.s32.totalorder %s306_s21, %s306_s21 }
  0x3a   :  { %357 = vmatprep.subr.bf16.mxu0 %v521_v0  ;;  %377 = vmatprep.subr.bf16.mxu1 %v521_v0  ;;  %v418_v12 = vld [vmem:[#allocation8 + $0x20] sm:$0xff]   ;;  %v412_v13 = vld [vmem:[#allocation6 + $0x38] sm:$0xff]   ;;  %v419_v14 = vld [vmem:[#allocation8 + $0x28] sm:$0xff]   ;;  %p489_p10 = scmp.ne.s32.totalorder %s306_s21, %s488_s22  ;;  %p494_p12 = scmp.lt.s32.totalorder %s488_s22, %s488_s22 }
  0x3b   :  { %v413_v15 = vld [vmem:[#allocation3] sm:$0xff]   ;;  %v420_v16 = vld [vmem:[#allocation8 + $0x30] sm:$0xff]  }
  0x3c   :  { %v421_v17 = vld [vmem:[#allocation8 + $0x38] sm:$0xff]   ;;  %p495_p13 = por %p494_p12, %p493_p11 }
  0x3d   :  { %358 = vmatpush3.bf16.msra.mxu0 %v406_v2  ;;  %378 = vmatpush3.bf16.msra.mxu1 %v415_v6 }
  0x3e   :  { %359 = vmatprep.subr.bf16.mxu0 %v521_v0  ;;  %379 = vmatprep.subr.bf16.mxu1 %v521_v0  ;;  %p496_p0 = pnand %p495_p13, %p489_p10 }
  0x41   :  { %360 = vmatpush3.bf16.msra.mxu0 %v407_v3  ;;  %380 = vmatpush3.bf16.msra.mxu1 %v416_v8 }
  0x42   :  { %361 = vmatprep.subr.bf16.mxu0 %v521_v0  ;;  %381 = vmatprep.subr.bf16.mxu1 %v521_v0 }
  0x45   :  { %362 = vmatpush3.bf16.msra.mxu0 %v408_v5  ;;  %382 = vmatpush3.bf16.msra.mxu1 %v417_v10 }
  0x46   :  { %363 = vmatprep.subr.bf16.mxu0 %v521_v0  ;;  %383 = vmatprep.subr.bf16.mxu1 %v521_v0 }
  0x49   :  { %364 = vmatpush3.bf16.msra.mxu0 %v409_v7  ;;  %384 = vmatpush3.bf16.msra.mxu1 %v418_v12 }
  0x4a   :  { %365 = vmatprep.subr.bf16.mxu0 %v521_v0  ;;  %385 = vmatprep.subr.bf16.mxu1 %v521_v0 }
  0x4d   :  { %366 = vmatpush3.bf16.msra.mxu0 %v410_v9  ;;  %386 = vmatpush3.bf16.msra.mxu1 %v419_v14 }
  0x4e   :  { %367 = vmatprep.subr.bf16.mxu0 %v521_v0  ;;  %387 = vmatprep.subr.bf16.mxu1 %v521_v0 }
  0x51   :  { %368 = vmatpush3.bf16.msra.mxu0 %v411_v11  ;;  %388 = vmatpush3.bf16.msra.mxu1 %v420_v16 }
  0x52   :  { %369 = vmatprep.subr.bf16.mxu0 %v521_v0  ;;  %389 = vmatprep.subr.bf16.mxu1 %v521_v0 }
  0x55   :  { %370 = vmatpush3.bf16.msra.mxu0 %v412_v13  ;;  %390 = vmatpush3.bf16.msra.mxu1 %v421_v17 }
  0x58   :  { %372 = vmatmul.mubr.bf16.vlgmr.msra.gmra.mrb[0].mxu0 %v413_v15 }
 0x12b   :  { %v176_v18 = vpop.f32.mrb[0].mxu0 }
 0x12c   :  { %v373_v19 = vpop.f32.mrb[1].mxu0 }
 0x12d   :  { %v179_v20 = vpop.f32.mrb[2].mxu0 }
 0x12e   :  { %v192_v21 = vpack.c.bf16 %v179_v20, %v176_v18  ;;  %v374_v22 = vpop.f32.mrb[3].mxu0 }
 0x130   :  { %392 = vmatmul.mubr.bf16.vlgmr.msra.gmra.mrb[0].mxu1 %v192_v21 }
 0x203   :  { %v291_v23 = vpop.f32.mrb[0].mxu1 }
 0x204   :  { %298 = vst [vmem:[#allocation9] sm:$0xff] %v291_v23  ;;  %v393_v24 = vpop.f32.mrb[1].mxu1 }
 0x205   :  { %v294_v25 = vpop.f32.mrb[2].mxu1 }
 0x206   :  { %299 = vst [vmem:[#allocation9 + $0x8] sm:$0xff] %v294_v25  ;;  %v394_v26 = vpop.f32.mrb[3].mxu1 }
 0x207   :  { %499 = shalt.err (!%p496_p0)
}
 0x208   :  { %s500_s25 = scalar_lea.hbm %s613_s3, 256 }
 0x209   :  { %p501_p1 = scmp.ne.s32.totalorder %s613_s3, %s500_s25  ;;  %p504_p2 = scmp.lt.u32.totalorder %s500_s25, %s613_s3 }
 0x20b   :  { %p506_p3 = pnand %p504_p2, %p501_p1 }
 0x20d   :  { %509 = shalt.err (!%p506_p3)
}
 0x20e   :  { %s524_s30 = smov 128   ;;  %s525_s4 = smov 8  }
 0x20f   :  { %311 = dma.vmem_to_hbm [thread:$0]  %s306_s21, 256, %s613_s3, [#allocation5], %s524_s30, %s524_s30, %s525_s4  }
 0x210   :  { %514 = dma.done.wait [#allocation5], 256  }
 0x211   :  { %515 = vsyncadd [#allocation5], 4294967040 }
 0x212   :  { %315 = vsyncpa [#allocation4], 1 }
 0x213   :  { %316 = vsyncpa [#allocation7], 1 }
 0x214   :  { %317 = vsyncpa [#allocation5], 1 }

</bundles_post_ra>
